<compile_context>
chip_gen: v7x
topology: tpu7x:2x2x1
jax: 0.10.0
libtpu: 0.0.40
codegen_flags: <defaults>
</compile_context>

<pallas_src>
import functools

import jax
import jax.numpy as jnp
from jax.experimental import pallas as pl
from jax.experimental.pallas import tpu as pltpu


# ----------------------------------------------------------------------------
# Kernels
# ----------------------------------------------------------------------------

def _layernorm_kernel(x_ref, w_ref, b_ref, o_ref, *, eps, inv_hidden):
    """Row-tile LayerNorm; the full hidden width sits on the lane axis."""
    # Pass 1: row mean with f32 accumulation taken directly off the input tile
    # (avoids pinning a persistent f32 copy of sub-32-bit tiles).
    mean = jnp.sum(x_ref[...], axis=-1, keepdims=True,
                   dtype=jnp.float32) * inv_hidden
    # Pass 2: centered two-pass variance (better numerics than E[x^2]-E[x]^2
    # for |mean| >> std, matching the fastfold/apex CUDA kernel) fused with
    # the normalize; `diff` is reused for the output expression.
    diff = x_ref[...].astype(jnp.float32) - mean
    var = jnp.sum(diff * diff, axis=-1, keepdims=True) * inv_hidden
    rstd = jax.lax.rsqrt(var + eps)
    w = w_ref[...].astype(jnp.float32)
    b = b_ref[...].astype(jnp.float32)
    o_ref[...] = (diff * rstd * w + b).astype(o_ref.dtype)


def _layernorm_wide_kernel(x_ref, w_ref, b_ref, o_ref,
                           s1_ref, s2_ref, mean_ref, rstd_ref,
                           *, eps, inv_hidden, ncol):
    """Wide-hidden fallback: hidden split into `ncol` column blocks.

    Grid axis 1 has 2*ncol steps: steps [0, ncol) accumulate per-row sum /
    sum-of-squares into VMEM scratch, step ncol finalizes mean/rstd, steps
    [ncol, 2*ncol) normalize and write the output column blocks.
    """
    j = pl.program_id(1)

    @pl.when(j == 0)
    def _init():
        s1_ref[...] = jnp.zeros_like(s1_ref)
        s2_ref[...] = jnp.zeros_like(s2_ref)

    @pl.when(j < ncol)
    def _stats():
        x = x_ref[...].astype(jnp.float32)
        s1_ref[...] = s1_ref[...] + jnp.sum(x, axis=-1, keepdims=True)
        s2_ref[...] = s2_ref[...] + jnp.sum(x * x, axis=-1, keepdims=True)

    @pl.when(j == ncol)
    def _finalize():
        mean = s1_ref[...] * inv_hidden
        var = jnp.maximum(s2_ref[...] * inv_hidden - mean * mean, 0.0)
        mean_ref[...] = mean
        rstd_ref[...] = jax.lax.rsqrt(var + eps)

    @pl.when(j >= ncol)
    def _normalize():
        x = x_ref[...].astype(jnp.float32)
        w = w_ref[...].astype(jnp.float32)
        b = b_ref[...].astype(jnp.float32)
        o_ref[...] = ((x - mean_ref[...]) * rstd_ref[...] * w
                      + b).astype(o_ref.dtype)


# ----------------------------------------------------------------------------
# Tiling heuristics
# ----------------------------------------------------------------------------

def _round_up(x, m):
    return ((x + m - 1) // m) * m


def _vmem_capacity_bytes():
    try:
        return int(pltpu.get_tpu_info().vmem_capacity_bytes)
    except Exception:
        return 64 * 1024 * 1024  # conservative fallback (v7x per-TC VMEM)


def _vmem_limit(demand_bytes, vmem_cap):
    # Size scoped VMEM to actual demand (+ headroom for Mosaic internals)
    # instead of grabbing 3/4 of physical VMEM; never below the 32 MiB default.
    return int(max(min(demand_bytes + (8 << 20), vmem_cap * 3 // 4), 32 << 20))


def _pick_block_rows(rows, hidden, itemsize, vmem_budget, tile_target):
    """Row-tile height for the narrow (full-hidden-per-block) path."""
    pack = max(8, 32 // itemsize)  # sublane packing: 8 f32, 16 bf16, 32 int8
    if rows <= pack:
        return rows  # single block; first dim equals the full array dim
    # Live bytes per tile row: double-buffered input + output plus ~3 full
    # f32 tile temporaries held by the kernel body.
    per_row = hidden * (4 * itemsize + 12)
    tm_vmem = max(vmem_budget // per_row, 1)
    tm_target = max(tile_target // (hidden * itemsize), 1)
    tm = max(min(tm_vmem, tm_target), pack)
    tm = (tm // pack) * pack
    # Guarantee >= 4 grid steps (>= 2 per TensorCore after v7x megacore
    # sharding) when rows permit, splitting rows as evenly as the sublane
    # pack allows so the two cores get balanced work.
    max_steps = pl.cdiv(rows, pack)
    steps = min(max(pl.cdiv(rows, tm), 4), max_steps)
    tm = _round_up(pl.cdiv(rows, steps), pack)
    return rows if tm >= rows else tm


def _pick_wide_blocks(rows, hidden, itemsize, vmem_budget, block_rows, block_cols):
    """Row/column tiles for the wide-hidden two-pass path (hidden % 128 == 0)."""
    pack = max(8, 32 // itemsize)
    if block_cols is not None:
        tc = int(block_cols)
    else:
        per_col = pack * (4 * itemsize + 12)  # bytes per hidden column @ pack rows
        tc_cap = max((vmem_budget // per_col) // 128 * 128, 128)
        tc_cap = min(tc_cap, hidden)
        tc = 128
        c = tc_cap
        while c >= 128:
            if hidden % c == 0:
                tc = c
                break
            c -= 128
    if block_rows is not None:
        tm = int(block_rows)
    else:
        per_row = tc * (4 * itemsize + 12) + 32
        tm = max((vmem_budget // per_row) // pack * pack, pack)
    if tm >= rows:
        tm = rows
    return tm, tc


# ----------------------------------------------------------------------------
# Wrapper
# ----------------------------------------------------------------------------

def mixed_fused_layer_norm(x, weight, bias, *, eps=1e-5,
                           block_rows=None, block_cols=None):
    """LayerNorm over the trailing dims matching weight.shape (affine)."""
    norm_shape = weight.shape
    assert bias.shape == norm_shape
    nlead = x.ndim - len(norm_shape)
    assert nlead >= 0 and x.shape[nlead:] == norm_shape

    hidden = 1
    for d in norm_shape:
        hidden *= d
    rows = 1
    for d in x.shape[:nlead]:
        rows *= d

    # TODO(synk): for hidden < 128 the output stores are masked partial vst;
    # folding several rows into the lane axis (segmented reduction) would
    # recover full lane utilization.
    x2 = x.reshape(rows, hidden)
    w2 = weight.reshape(1, hidden)
    b2 = bias.reshape(1, hidden)

    itemsize = jnp.dtype(x.dtype).itemsize
    pack = max(8, 32 // itemsize)

    vmem_cap = _vmem_capacity_bytes()
    vmem_budget = vmem_cap // 2   # live-tile budget (dbuf in/out + f32 temps)
    tile_target = vmem_cap // 12  # ~5 MiB input tiles on v7x, ~10 MiB on v5e/v6e

    per_row = hidden * (4 * itemsize + 12)
    use_wide = (block_cols is not None) or (min(rows, pack) * per_row > vmem_budget)
    if use_wide and hidden % 128 != 0:
        # TODO(synk): mask ragged hidden blocks so the wide path also covers
        # normalized shapes that are not a multiple of 128.
        use_wide = False

    param_itemsize = jnp.dtype(weight.dtype).itemsize

    if not use_wide:
        tm = block_rows if block_rows is not None else _pick_block_rows(
            rows, hidden, itemsize, vmem_budget, tile_target)
        grid = (pl.cdiv(rows, tm),)
        demand = tm * per_row + 32 * hidden * max(param_itemsize, 4)
        cost = pl.CostEstimate(
            flops=8 * rows * hidden,
            transcendentals=rows,
            bytes_accessed=2 * rows * hidden * itemsize
            + 2 * hidden * param_itemsize,
        )
        out = pl.pallas_call(
            functools.partial(_layernorm_kernel, eps=float(eps),
                              inv_hidden=1.0 / hidden),
            out_shape=jax.ShapeDtypeStruct((rows, hidden), x.dtype),
            grid_spec=pltpu.PrefetchScalarGridSpec(
                num_scalar_prefetch=0,
                grid=grid,
                in_specs=[
                    # TODO(synk): sweep pipeline_mode=pl.Buffered(3) on x/out
                    # if a v7x trace shows exposed DMA at 3.2 TB/s.
                    pl.BlockSpec((tm, hidden), lambda i: (i, 0)),
                    pl.BlockSpec((1, hidden), lambda i: (0, 0)),
                    pl.BlockSpec((1, hidden), lambda i: (0, 0)),
                ],
                out_specs=pl.BlockSpec((tm, hidden), lambda i: (i, 0)),
            ),
            compiler_params=pltpu.CompilerParams(
                dimension_semantics=("parallel",),
                vmem_limit_bytes=_vmem_limit(demand, vmem_cap),
            ),
            cost_estimate=cost,
        )(x2, w2, b2)
    else:
        tm, tc = _pick_wide_blocks(rows, hidden, itemsize, vmem_budget,
                                   block_rows, block_cols)
        assert hidden % tc == 0
        ncol = hidden // tc
        grid = (pl.cdiv(rows, tm), 2 * ncol)
        demand = tm * (tc * (4 * itemsize + 12) + 32) + 32 * tc * max(param_itemsize, 4)
        cost = pl.CostEstimate(
            flops=8 * rows * hidden,
            transcendentals=rows,
            bytes_accessed=3 * rows * hidden * itemsize
            + 2 * hidden * param_itemsize,
        )
        out = pl.pallas_call(
            functools.partial(_layernorm_wide_kernel, eps=float(eps),
                              inv_hidden=1.0 / hidden, ncol=ncol),
            out_shape=jax.ShapeDtypeStruct((rows, hidden), x.dtype),
            grid_spec=pltpu.PrefetchScalarGridSpec(
                num_scalar_prefetch=0,
                grid=grid,
                in_specs=[
                    pl.BlockSpec((tm, tc), lambda i, j: (i, j % ncol)),
                    pl.BlockSpec((1, tc), lambda i, j: (0, j % ncol)),
                    pl.BlockSpec((1, tc), lambda i, j: (0, j % ncol)),
                ],
                # Stays on column block 0 during the stats sweep (never flushed
                # until the normalize sweep has filled it), then walks the
                # column blocks exactly once each.
                out_specs=pl.BlockSpec(
                    (tm, tc), lambda i, j: (i, jnp.maximum(j - ncol, 0))),
                scratch_shapes=[
                    pltpu.VMEM((tm, 1), jnp.float32),  # sum(x)
                    pltpu.VMEM((tm, 1), jnp.float32),  # sum(x^2)
                    pltpu.VMEM((tm, 1), jnp.float32),  # mean
                    pltpu.VMEM((tm, 1), jnp.float32),  # rstd
                ],
            ),
            compiler_params=pltpu.CompilerParams(
                dimension_semantics=("parallel", "arbitrary"),
                vmem_limit_bytes=_vmem_limit(demand, vmem_cap),
            ),
            cost_estimate=cost,
        )(x2, w2, b2)

    return out.reshape(x.shape)


# ----------------------------------------------------------------------------
# Self-test
# ----------------------------------------------------------------------------

if __name__ == "__main__":
    key = jax.random.PRNGKey(0)
    k1, k2, k3, k4, k5 = jax.random.split(key, 5)

    def ref_layernorm(x, w, b, eps):
        xf = x.astype(jnp.float32)
        mean = jnp.mean(xf, axis=-1, keepdims=True)
        var = jnp.mean((xf - mean) ** 2, axis=-1, keepdims=True)
        return ((xf - mean) * jax.lax.rsqrt(var + eps)
                * w.astype(jnp.float32) + b.astype(jnp.float32))

    # --- test 1: f32, ragged row tail, hidden = 128 (lane-dense output) -----
    # Module init is weight=ones, bias=zeros; perturb so the affine path is live.
    batch, seq, hidden = 2, 9, 128
    x = jax.random.normal(k1, (batch, seq, hidden), dtype=jnp.float32)
    weight = jnp.ones((hidden,), jnp.float32) + 0.1 * jax.random.normal(
        k2, (hidden,), dtype=jnp.float32)
    bias = 0.1 * jax.random.normal(k3, (hidden,), dtype=jnp.float32)

    out = mixed_fused_layer_norm(x, weight, bias, eps=1e-5)
    jax.block_until_ready(out)
    ref = ref_layernorm(x, weight, bias, 1e-5)
    assert out.shape == x.shape and out.dtype == x.dtype
    assert float(jnp.max(jnp.abs(out.astype(jnp.float32) - ref))) < 1e-4

    # --- test 2: bf16 input (sub-32-bit path, f32 accumulation) -------------
    xb = x.astype(jnp.bfloat16)
    wb = weight.astype(jnp.bfloat16)
    bb = bias.astype(jnp.bfloat16)
    outb = mixed_fused_layer_norm(xb, wb, bb, eps=1e-5)
    jax.block_until_ready(outb)
    refb = ref_layernorm(xb, wb, bb, 1e-5)
    assert outb.dtype == jnp.bfloat16
    assert float(jnp.max(jnp.abs(outb.astype(jnp.float32) - refb))) < 5e-2

    # --- test 3: forced wide-hidden fallback (hidden split over 2 blocks) ---
    rows2, hidden2 = 16, 256
    x3 = jax.random.normal(k4, (rows2, hidden2), dtype=jnp.float32)
    w3 = jnp.ones((hidden2,), jnp.float32) + 0.1 * jax.random.normal(
        k5, (hidden2,), dtype=jnp.float32)
    b3 = 0.05 * jnp.ones((hidden2,), jnp.float32)
    out3 = mixed_fused_layer_norm(x3, w3, b3, eps=1e-5,
                                  block_rows=8, block_cols=128)
    jax.block_until_ready(out3)
    ref3 = ref_layernorm(x3, w3, b3, 1e-5)
    assert float(jnp.max(jnp.abs(out3 - ref3))) < 1e-4

    print("KERNEL_OK")
</pallas_src>

<mosaic_0001>
module attributes {stable_mosaic.version = 11 : i64} {
  func.func @_layernorm_kernel(%arg0: i32, %arg1: memref<8x128xf32, #tpu.memory_space<vmem>>, %arg2: memref<1x128xf32, #tpu.memory_space<vmem>>, %arg3: memref<1x128xf32, #tpu.memory_space<vmem>>, %arg4: memref<8x128xf32, #tpu.memory_space<vmem>>) attributes {dimension_semantics = [#tpu.dimension_semantics<parallel>], iteration_bounds = array<i64: 3>, scalar_prefetch = 0 : i64, scratch_operands = 0 : i64, tpu.core_type = #tpu.core_type<tc>, window_params = [{transform_indices = @transform_0, window_bounds = array<i64: 8, 128>}, {pipeline_mode = #tpu.pipeline_mode<synchronous>, transform_indices = @transform_1, window_bounds = array<i64: 1, 128>}, {pipeline_mode = #tpu.pipeline_mode<synchronous>, transform_indices = @transform_2, window_bounds = array<i64: 1, 128>}, {transform_indices = @transform_3, window_bounds = array<i64: 8, 128>}]} {
    %c0 = arith.constant 0 : index
    %c0_0 = arith.constant 0 : index
    %0 = vector.load %arg1[%c0, %c0_0] : memref<8x128xf32, #tpu.memory_space<vmem>>, vector<8x128xf32>
    %cst = arith.constant dense<0.000000e+00> : vector<8xf32>
    %1 = vector.multi_reduction <add>, %0, %cst [1] : vector<8x128xf32> to vector<8xf32>
    %2 = vector.shape_cast %1 : vector<8xf32> to vector<8x1xf32>
    %cst_1 = arith.constant 7.812500e-03 : f32
    %3 = vector.broadcast %cst_1 : f32 to vector<8x1xf32>
    %4 = arith.mulf %2, %3 : vector<8x1xf32>
    %c0_2 = arith.constant 0 : index
    %c0_3 = arith.constant 0 : index
    %5 = vector.load %arg1[%c0_2, %c0_3] : memref<8x128xf32, #tpu.memory_space<vmem>>, vector<8x128xf32>
    %6 = vector.broadcast %4 : vector<8x1xf32> to vector<8x128xf32>
    %7 = arith.subf %5, %6 : vector<8x128xf32>
    %8 = arith.mulf %7, %7 : vector<8x128xf32>
    %cst_4 = arith.constant dense<0.000000e+00> : vector<8xf32>
    %9 = vector.multi_reduction <add>, %8, %cst_4 [1] : vector<8x128xf32> to vector<8xf32>
    %10 = vector.shape_cast %9 : vector<8xf32> to vector<8x1xf32>
    %cst_5 = arith.constant 7.812500e-03 : f32
    %11 = vector.broadcast %cst_5 : f32 to vector<8x1xf32>
    %12 = arith.mulf %10, %11 : vector<8x1xf32>
    %cst_6 = arith.constant 9.99999974E-6 : f32
    %13 = vector.broadcast %cst_6 : f32 to vector<8x1xf32>
    %14 = arith.addf %12, %13 : vector<8x1xf32>
    %15 = math.rsqrt %14 : vector<8x1xf32>
    %c0_7 = arith.constant 0 : index
    %c0_8 = arith.constant 0 : index
    %16 = vector.load %arg2[%c0_7, %c0_8] : memref<1x128xf32, #tpu.memory_space<vmem>>, vector<1x128xf32>
    %c0_9 = arith.constant 0 : index
    %c0_10 = arith.constant 0 : index
    %17 = vector.load %arg3[%c0_9, %c0_10] : memref<1x128xf32, #tpu.memory_space<vmem>>, vector<1x128xf32>
    %18 = vector.broadcast %15 : vector<8x1xf32> to vector<8x128xf32>
    %19 = arith.mulf %7, %18 : vector<8x128xf32>
    %20 = vector.broadcast %16 : vector<1x128xf32> to vector<8x128xf32>
    %21 = arith.mulf %19, %20 : vector<8x128xf32>
    %22 = vector.broadcast %17 : vector<1x128xf32> to vector<8x128xf32>
    %23 = arith.addf %21, %22 : vector<8x128xf32>
    %c0_11 = arith.constant 0 : index
    %c0_12 = arith.constant 0 : index
    %24 = vector.load %arg4[%c0_11, %c0_12] : memref<8x128xf32, #tpu.memory_space<vmem>>, vector<8x128xf32>
    tpu.vector_store %arg4[%c0_11, %c0_12], %23 {strides = array<i32>} : memref<8x128xf32, #tpu.memory_space<vmem>>, vector<8x128xf32>,
    return
  }
  func.func @transform_0(%arg0: i32) -> (i32, i32) {
    %c0_i32 = arith.constant 0 : i32
    %c0_i32_0 = arith.constant 0 : i32
    return %arg0, %c0_i32 : i32, i32
  }
  func.func @transform_1(%arg0: i32) -> (i32, i32) {
    %c0_i32 = arith.constant 0 : i32
    %c0_i32_0 = arith.constant 0 : i32
    %c0_i32_1 = arith.constant 0 : i32
    return %c0_i32, %c0_i32_0 : i32, i32
  }
  func.func @transform_2(%arg0: i32) -> (i32, i32) {
    %c0_i32 = arith.constant 0 : i32
    %c0_i32_0 = arith.constant 0 : i32
    %c0_i32_1 = arith.constant 0 : i32
    return %c0_i32, %c0_i32_0 : i32, i32
  }
  func.func @transform_3(%arg0: i32) -> (i32, i32) {
    %c0_i32 = arith.constant 0 : i32
    %c0_i32_0 = arith.constant 0 : i32
    return %arg0, %c0_i32 : i32, i32
  }
}

</mosaic_0001>

<bundles_post_ra>
// kernel: tpu_custom_call.1
= control target key start
LH: loop header
LB: loop body
LE: loop exit
PB: predicated region body
PF: predicated region fallthrough
CT: control target
= control target key end

     0   :  { %8 = vsyncpa [#allocation3], 0  ;;  %s646_s0 = inlined_call_operand.hbm [shape: f32[18,128], index: 0, kind: input, shape index: {}]   ;;  %s647_s1 = inlined_call_operand.vmem [shape: f32[1,128], index: 1, kind: input, shape index: {}]   ;;  %s648_s2 = inlined_call_operand.vmem [shape: f32[1,128], index: 2, kind: input, shape index: {}]   ;;  %s649_s3 = inlined_call_operand.hbm [shape: f32[18,128], index: 3, kind: output, shape index: {}]  }
   0x1   :  { %10 = vsyncpa [#allocation3 + $0x1], 0 }
   0x2   :  { %11 = vsyncpa [#allocation4], 0 }
   0x3   :  { %13 = vsyncpa [#allocation4 + $0x1], 0  ;;  %s481_s12 = smov 0   ;;  %s483_s13 = smov 0  }
   0x4   :  { %s485_s14 = smov 0   ;;  %s487_s15 = smov 0  }
   0x5 LB: > { %s502_s16 = sadd.s32 4294967295, %s457_s15   ;;  %s299_s17 = sadd.s32 4294967294, %s457_s15   ;;  %s457_s15 = sphi %s487_s15, %s663_s15   ;;  %s453_s14 = sphi %s485_s14, %s662_s14   ;;  %s449_s13 = sphi %s483_s13, %s661_s13   ;;  %s445_s12 = sphi %s481_s12, %s660_s12  }
   0x6   : > { %s506_s18 = sadd.s32 1, %s457_s15   ;;  %s26_s19 = sadd.s32 1, %s453_s14 }
   0x7   : > { %s23_s20 = ssub.s32 %s457_s15, %s506_s18  ;;  %p33_p0 = scmp.ne.s32.totalorder %s453_s14, %s449_s13 }
   0x8   : > { %p24_p1 = scmp.eq.s32.totalorder %s23_s20, 0  ;;  %p34_p2 = scmp.eq.s32.totalorder %s457_s15, 0 }
   0x9   : > { %p39_p3 = scmp.ne.s32.totalorder %s449_s13, %s445_s12  ;;  %p40_p4 = scmp.eq.s32.totalorder %s502_s16, 0 }
   0xa   : > { %s518_s21 = scalar_select %p24_p1, %s453_s14, %s26_s19  }
   0xb   : > { %p520_p5 = por %p34_p2, %p33_p0  ;;  %p524_p6 = por %p40_p4, %p39_p3 }
   0xc   : > { %p105_p7 = scmp.eq.s32.totalorder %s502_s16, 2  ;;  %p111_p8 = scmp.eq.s32.totalorder %s299_s17, 2 }
   0xd   : > { %p325_p9 = scmp.lt.s32.totalorder %s457_s15, 3  ;;  %s137_s26 = sand.u32 1, %s453_s14  }
   0xe   : > { %p530_p10 = por %p105_p7, %p33_p0  ;;  %p534_p11 = por %p111_p8, %p39_p3 }
   0xf   : > { %s303_s27 = sshll.u32 %s457_s15, 7  ;;  %s302_s28 = sshll.u32 %s137_s26, 3 }
  0x10   : > { %s653_s24 = scalar_select %p530_p10, 1, 0 }
  0x11   : > { %s654_s25 = scalar_select %p534_p11, 1, 0 }
  0x12   : > { %s543_s4 = scalar_lea.hbm %s646_s0, %s303_s27  ;;  %s141_s5 = scalar_lea.vmem [#allocation2], %s302_s28 }
  0x13   : > { %s148_s6 = sshll.u32 %s141_s5, 4  ;;  %p547_p12 = pnand %p325_p9, %p520_p5  ;;  %s551_s6 = int_to_ptr.vmem [resolvable:$true] %s148_s6 }
  0x14   : > { %s138_s8 = scalar_lea.sflag [#allocation3], %s137_s26  ;;  %s361_s9 = scalar_lea.hbm %s543_s4, 128 }
  0x15   : > { %p362_p1 = scmp.ne.s32.totalorder %s543_s4, %s361_s9  ;;  %p363_p2 = pneg %p547_p12 }
  0x16   : > { %s366_s17 = scalar_lea.hbm %s646_s0, 384  ;;  %p367_p5 = scmp.lt.u32.totalorder %s543_s4, %s646_s0 }
  0x17   : > { %p364_p3 = pnand %p363_p2, %p362_p1  ;;  %p368_p7 = scmp.lt.u32.totalorder %s366_s17, %s361_s9 }
  0x18   : > { %p370_p9 = scmp.lt.u32.totalorder %s361_s9, %s543_s4 }
  0x19   : > { %p365_p4 = pneg %p364_p3  ;;  %p369_p8 = por %p368_p7, %p367_p5 }
  0x1b   : > { %p371_p13 = por %p370_p9, %p369_p8 }
  0x1d   : > { %p372_p0 = pnand %p371_p13, %p365_p4 }
  0x1f   : > { %375 = shalt.err (!%p372_p0)
}
  0x20   : > { %s376_s22 = scalar_lea.vmem %s551_s6, 128  ;;  %s459_s26 = smov [#allocation2]  }
  0x21   : > { %p377_p1 = scmp.ne.s32.totalorder %s551_s6, %s376_s22  ;;  %s381_s27 = sshll.u32 %s459_s26, 4  ;;  %s382_s27 = int_to_ptr.vmem [resolvable:$false] %s381_s27 }
  0x22   : > { %s383_s28 = scalar_lea.vmem %s382_s27, 256  ;;  %p384_p10 = scmp.lt.s32.totalorder %s551_s6, %s382_s27 }
  0x23   : > { %p379_p3 = pnand %p377_p1, %p363_p2  ;;  %p385_p5 = scmp.lt.s32.totalorder %s383_s28, %s376_s22 }
  0x25   : > { %p380_p11 = pneg %p379_p3  ;;  %p386_p7 = por %p385_p5, %p384_p10 }
  0x27   : > { %p387_p8 = pnand %p386_p7, %p380_p11 }
  0x29   : > { %390 = shalt.err (!%p387_p8)
}
  0x2a   : > { %320 = dma.hbm_to_vmem [thread:$0]  (!%p547_p12), %s543_s4, 128, %s551_s6, %s138_s8  }
  0x2b   : > { %p656_p13 = scmp.lt.s32.totalorder %s457_s15, 4  ;;  %p657_p0 = scmp.ge.s32.totalorder %s457_s15, 1 }
  0x2d   : > { %p154_p2 = pnand %p657_p0, %p656_p13 }
  0x2e   : > { %s585_s29 = sand.u32 (!%p154_p2), 1, %s449_s13  }
  0x2f   : > { %157 = sbr.rel (%p154_p2) target bundleno = 381 (0x17d), region = 32  ;;  %s305_s30 = sshll.u32 (!%p154_p2), %s585_s29, 3 }
  0x30   : > { %s160_s5 = scalar_lea.sflag (!%p154_p2), [#allocation3], %s585_s29  ;;  %s163_s9 = scalar_lea.vmem (!%p154_p2), [#allocation2], %s305_s30 }
  0x36   : > { %436 = dma.done.wait (%p524_p6), %s160_s5, 128  }
  0x37   : > { %438 = vsyncadd (%p524_p6), %s160_s5, 4294967168  ;;  %v186_v0 = vld [vmem:[%s163_s9] sm:$0xff]  ;;  %s310_s8 = sshll.u32 %s502_s16, 7  ;;  %s185_s10 = scalar_lea.vmem [#allocation5], %s305_s30 }
  0x38   : > { %187 = vadd.xlane.f32.xlu0 %v186_v0  ;;  %v307_v9 = vld [vmem:[%s647_s1] ss:$0 sm:$0xff]  ;;  %s229_s11 = sshll.u32 %s185_s10, 4  ;;  %s603_s20 = scalar_lea.hbm %s649_s3, %s310_s8  ;;  %s605_s11 = int_to_ptr.vmem [resolvable:$true] %s229_s11 }
  0x39   : > { %v308_v11 = vld [vmem:[%s648_s2] ss:$0 sm:$0xff]  ;;  %s216_s22 = scalar_lea.sflag [#allocation4], %s585_s29  ;;  %s391_s26 = scalar_lea.vmem %s605_s11, 128 }
  0x3a   : > { %p392_p6 = scmp.ne.s32.totalorder %s605_s11, %s391_s26  ;;  %p658_p10 = scmp.ne.s32.totalorder %s653_s24, 0 }
  0x3b   : > { %s460_s16 = smov [#allocation5]  }
  0x3c   : > { %p393_p11 = pnand %p392_p6, %p658_p10  ;;  %s395_s27 = sshll.u32 %s460_s16, 4  ;;  %s396_s27 = int_to_ptr.vmem [resolvable:$false] %s395_s27 }
  0x3d   : > { %s397_s28 = scalar_lea.vmem %s396_s27, 256  ;;  %p398_p4 = scmp.lt.s32.totalorder %s605_s11, %s396_s27 }
  0x3e   : > { %p394_p12 = pneg %p393_p11  ;;  %p399_p9 = scmp.lt.s32.totalorder %s397_s28, %s391_s26 }
  0x40   : > { %p400_p1 = por %p399_p9, %p398_p4 }
  0x42   : > { %p401_p3 = pnand %p400_p1, %p394_p12 }
  0xc5   : > { %v188_v1 = vpop.xlane.xlu0 %187 }
  0xc6   : > { %v189_v2 = vmul.f32 0.0078125, %v188_v1 }
  0xc8   : > { %v190_v3 = vsub.f32 %v186_v0, %v189_v2 }
  0xca   : > { %v191_v4 = vmul.f32 %v190_v3, %v190_v3 }
  0xcc   : > { %192 = vadd.xlane.f32.xlu0 %v191_v4 }
 0x159   : > { %v193_v5 = vpop.xlane.xlu0 %192 }
 0x15a   : > { %v194_v6 = vmul.f32 0.0078125, %v193_v5 }
 0x15c   : > { %v195_v7 = vadd.f32 1e-05, %v194_v6 }
 0x15e   : > { %359 = vrsqrt.f32 %v195_v7 }
 0x168   : > { %v360_v8 = vpop.eup %359 }
 0x169   : > { %v199_v10 = vmul.f32 %v360_v8, %v190_v3 }
 0x16b   : > { %v206_v12 = vmul.f32 %v307_v9, %v199_v10 }
 0x16d   : > { %v213_v13 = vadd.f32 %v308_v11, %v206_v12 }
 0x16f   : > { %214 = vst [vmem:[%s185_s10] sm:$0xff] %v213_v13 }
 0x170   : > { %404 = shalt.err (!%p401_p3)
}
 0x171   : > { %s405_s29 = scalar_lea.hbm %s603_s20, 128  ;;  %s409_s9 = scalar_lea.hbm %s649_s3, 384 }
 0x172   : > { %p406_p5 = scmp.ne.s32.totalorder %s603_s20, %s405_s29  ;;  %p410_p13 = scmp.lt.u32.totalorder %s603_s20, %s649_s3 }
 0x173   : > { %p411_p0 = scmp.lt.u32.totalorder %s409_s9, %s405_s29  ;;  %p413_p6 = scmp.lt.u32.totalorder %s405_s29, %s603_s20 }
 0x174   : > { %p407_p7 = pnand %p406_p5, %p658_p10 }
 0x175   : > { %p412_p2 = por %p411_p0, %p410_p13 }
 0x176   : > { %p408_p8 = pneg %p407_p7 }
 0x177   : > { %p414_p11 = por %p413_p6, %p412_p2 }
 0x179   : > { %p415_p12 = pnand %p414_p11, %p408_p8 }
 0x17b   : > { %418 = shalt.err (!%p415_p12)
}
 0x17c   : > { %315 = dma.vmem_to_hbm [thread:$0]  (%p658_p10), %s605_s11, 128, %s603_s20, %s216_s22  }
 0x17d PF: > { %p326_p4 = scmp.ge.s32.totalorder %s457_s15, 2  ;;  %s241_s23 = sand.u32 1, %s445_s12  }
 0x17e   : > { %p659_p9 = scmp.ne.s32.totalorder %s654_s25, 0  ;;  %s242_s7 = scalar_lea.sflag [#allocation4], %s241_s23 }
 0x180   : > { %p322_p1 = pnand %p326_p4, %p659_p9 }
 0x182   : > { %440 = dma.done.wait (!%p322_p1), %s242_s7, 128  }
 0x183   : > { %442 = vsyncadd (!%p322_p1), %s242_s7, 4294967168  ;;  %p16_p3 = scmp.ge.s32.totalorder %s506_s18, 5   ;;  %s660_s12 = smov %s449_s13 }
 0x184   : > { %s661_s13 = smov %s453_s14  ;;  %s662_s14 = smov %s518_s21 }
 0x185   : > { %s663_s15 = smov %s506_s18  ;;  %18 = sbr.rel (!%p16_p3) target bundleno = 5 (0x5), region = 77 }
 0x18c   :  { %247 = vsyncpa [#allocation3], 1 }
 0x18d   :  { %249 = vsyncpa [#allocation3 + $0x1], 1 }
 0x18e   :  { %250 = vsyncpa [#allocation4], 1 }
 0x18f   :  { %252 = vsyncpa [#allocation4 + $0x1], 1 }

</bundles_post_ra>
